<compile_context>
chip_gen: v7x
topology: tpu7x:2x2x1
jax: 0.10.0
libtpu: 0.0.40
codegen_flags: <defaults>
</compile_context>

<pallas_src>
import functools

import jax
import jax.numpy as jnp
from jax import lax
from jax.experimental import pallas as pl
from jax.experimental.pallas import tpu as pltpu

NEG_INF = -1e30  # finite "minus infinity" -> no inf-inf NaN risk


def _round_up(x, m):
    return (x + m - 1) // m * m


# ---------------------------------------------------------------------------
# Kernel 1: fused QKV projection (the three 1x1 convs as one lane-dense matmul)
# ---------------------------------------------------------------------------
def qkv_proj_kernel(x_ref, w_ref, b_ref, q_ref, k_ref, v_ref, *, c8p):
    x = x_ref[0].astype(jnp.bfloat16)                    # (tn, Cp)
    w = w_ref[...].astype(jnp.bfloat16)                  # (Cp, Dp)
    packed = jnp.dot(x, w, preferred_element_type=jnp.float32) + b_ref[...]
    # Slice boundaries fall on 128-lane edges -> no hidden VMEM copies.
    q_ref[0] = packed[:, :c8p].astype(q_ref.dtype)
    k_ref[0] = packed[:, c8p:2 * c8p].astype(k_ref.dtype)
    v_ref[0] = packed[:, 2 * c8p:].astype(v_ref.dtype)


# ---------------------------------------------------------------------------
# Kernel 2: flash-style position attention + residual (gamma*out + x)
# ---------------------------------------------------------------------------
def flash_pam_kernel(gamma_ref, q_ref, k_ref, v_ref, x_ref, o_ref,
                     m_sc, l_sc, acc_sc, *, n_valid, n_padded, tk):
    ki = pl.program_id(2)

    @pl.when(ki == 0)
    def _init():
        m_sc[...] = jnp.full_like(m_sc, NEG_INF)
        l_sc[...] = jnp.zeros_like(l_sc)
        acc_sc[...] = jnp.zeros_like(acc_sc)

    q = q_ref[0]                                         # (tq, C8p) bf16
    k = k_ref[0]                                         # (tk, C8p) bf16
    # energy tile: contract channel dims natively (no transpose of k)
    s = lax.dot_general(q, k, (((1,), (1,)), ((), ())),
                        preferred_element_type=jnp.float32)   # (tq, tk) f32

    # Mask padded key positions (statically removed when N % tk == 0).
    if n_padded != n_valid:
        col = ki * tk + lax.broadcasted_iota(jnp.int32, (1, tk), 1)
        s = jnp.where(col < n_valid, s, NEG_INF)

    # Online (flash) softmax update, all in f32 on the VPU/EUP.
    m_prev = m_sc[...]
    m_new = jnp.maximum(m_prev, jnp.max(s, axis=-1, keepdims=True))
    alpha = jnp.exp(m_prev - m_new)
    p = jnp.exp(s - m_new)
    l_sc[...] = alpha * l_sc[...] + jnp.sum(p, axis=-1, keepdims=True)
    acc_sc[...] = alpha * acc_sc[...] + jnp.dot(
        p.astype(jnp.bfloat16), v_ref[0], preferred_element_type=jnp.float32)
    m_sc[...] = m_new

    @pl.when(ki == pl.num_programs(2) - 1)
    def _finalize():
        out = acc_sc[...] * pl.reciprocal(l_sc[...], approx=True)
        o_ref[0] = (gamma_ref[0] * out
                    + x_ref[0].astype(jnp.float32)).astype(o_ref.dtype)


# ---------------------------------------------------------------------------
# Wrapper
# ---------------------------------------------------------------------------
def _pack_qkv_weights(params, C, C8, Cp, C8p):
    def pad2(a, r, c):
        return jnp.pad(a, ((0, r - a.shape[0]), (0, c - a.shape[1])))
    wq = pad2(params["wq"], Cp, C8p)
    wk = pad2(params["wk"], Cp, C8p)
    wv = pad2(params["wv"], Cp, Cp)
    bq = pad2(params["bq"], 1, C8p)
    bk = pad2(params["bk"], 1, C8p)
    bv = pad2(params["bv"], 1, Cp)
    w_packed = jnp.concatenate([wq, wk, wv], axis=1)     # (Cp, 2*C8p + Cp)
    b_packed = jnp.concatenate([bq, bk, bv], axis=1)     # (1,  2*C8p + Cp)
    return w_packed, b_packed


def pam_forward(x_nchw, params, *, tile_n=128):
    """x_nchw: (B, C, H, W) float32.  Returns (B, C, H, W)."""
    B, C, H, W = x_nchw.shape
    N = H * W
    C8 = max(C // 8, 1)
    Cp = _round_up(C, 128)
    C8p = _round_up(C8, 128)
    Np = _round_up(N, tile_n)
    Dp = 2 * C8p + Cp
    nt = Np // tile_n

    # NCHW -> (B, N, C), zero-pad spatial and channel dims to tile multiples.
    x_bnc = jnp.transpose(x_nchw.reshape(B, C, N), (0, 2, 1))
    x_pad = jnp.pad(x_bnc, ((0, 0), (0, Np - N), (0, Cp - C)))

    w_packed, b_packed = _pack_qkv_weights(params, C, C8, Cp, C8p)

    vmem_limit = 32 * 1024 * 1024

    # ---- kernel 1: fused QKV projection ----------------------------------
    q_bf, k_bf, v_bf = pl.pallas_call(
        functools.partial(qkv_proj_kernel, c8p=C8p),
        out_shape=(
            jax.ShapeDtypeStruct((B, Np, C8p), jnp.bfloat16),
            jax.ShapeDtypeStruct((B, Np, C8p), jnp.bfloat16),
            jax.ShapeDtypeStruct((B, Np, Cp), jnp.bfloat16),
        ),
        grid_spec=pltpu.PrefetchScalarGridSpec(
            num_scalar_prefetch=0,
            grid=(B, nt),
            in_specs=[
                pl.BlockSpec((1, tile_n, Cp), lambda b, i: (b, i, 0)),
                pl.BlockSpec((Cp, Dp), lambda b, i: (0, 0)),
                pl.BlockSpec((1, Dp), lambda b, i: (0, 0)),
            ],
            out_specs=(
                pl.BlockSpec((1, tile_n, C8p), lambda b, i: (b, i, 0)),
                pl.BlockSpec((1, tile_n, C8p), lambda b, i: (b, i, 0)),
                pl.BlockSpec((1, tile_n, Cp), lambda b, i: (b, i, 0)),
            ),
        ),
        compiler_params=pltpu.CompilerParams(
            dimension_semantics=("parallel", "parallel"),
            vmem_limit_bytes=vmem_limit),
        cost_estimate=pl.CostEstimate(
            flops=2 * B * Np * Cp * Dp,
            transcendentals=0,
            bytes_accessed=4 * B * Np * Cp + 4 * Cp * Dp + 2 * B * Np * Dp),
    )(x_pad, w_packed, b_packed)

    # ---- kernel 2: flash position attention + residual -------------------
    out_pad = pl.pallas_call(
        functools.partial(flash_pam_kernel,
                          n_valid=N, n_padded=Np, tk=tile_n),
        out_shape=jax.ShapeDtypeStruct((B, Np, Cp), x_nchw.dtype),
        grid_spec=pltpu.PrefetchScalarGridSpec(
            num_scalar_prefetch=0,
            grid=(B, nt, nt),
            in_specs=[
                pl.BlockSpec(memory_space=pltpu.SMEM),                         # gamma
                pl.BlockSpec((1, tile_n, C8p), lambda b, qi, ki: (b, qi, 0)),  # q
                pl.BlockSpec((1, tile_n, C8p), lambda b, qi, ki: (b, ki, 0)),  # k
                pl.BlockSpec((1, tile_n, Cp), lambda b, qi, ki: (b, ki, 0)),   # v
                pl.BlockSpec((1, tile_n, Cp), lambda b, qi, ki: (b, qi, 0)),   # x (residual)
            ],
            out_specs=pl.BlockSpec((1, tile_n, Cp), lambda b, qi, ki: (b, qi, 0)),
            scratch_shapes=[
                pltpu.VMEM((tile_n, 1), jnp.float32),    # running row max
                pltpu.VMEM((tile_n, 1), jnp.float32),    # running denominator
                pltpu.VMEM((tile_n, Cp), jnp.float32),   # output accumulator
            ],
        ),
        compiler_params=pltpu.CompilerParams(
            dimension_semantics=("parallel", "parallel", "arbitrary"),
            vmem_limit_bytes=vmem_limit),
        cost_estimate=pl.CostEstimate(
            flops=2 * B * Np * Np * (C8p + Cp),
            transcendentals=B * Np * Np,
            bytes_accessed=2 * B * Np * (2 * C8p + Cp) + 8 * B * Np * Cp),
    )(params["gamma"], q_bf, k_bf, v_bf, x_pad)

    # strip padding, (B, N, C) -> NCHW
    out_bnc = out_pad[:, :N, :C]
    return jnp.transpose(out_bnc, (0, 2, 1)).reshape(B, C, H, W)


# ---------------------------------------------------------------------------
# Pure-JAX reference (mirrors the PyTorch forward exactly, in f32)
# ---------------------------------------------------------------------------
def pam_reference(x_nchw, params):
    B, C, H, W = x_nchw.shape
    N = H * W
    x_bnc = jnp.transpose(x_nchw.reshape(B, C, N), (0, 2, 1))          # (B,N,C)
    q = x_bnc @ params["wq"] + params["bq"]                            # (B,N,C8)
    k = x_bnc @ params["wk"] + params["bk"]                            # (B,N,C8)
    v = x_bnc @ params["wv"] + params["bv"]                            # (B,N,C)
    energy = jnp.einsum("bnc,bmc->bnm", q, k)                          # (B,N,N)
    attn = jax.nn.softmax(energy, axis=-1)
    out = jnp.einsum("bnm,bmc->bnc", attn, v)                          # (B,N,C)
    out = params["gamma"][0] * out + x_bnc
    return jnp.transpose(out, (0, 2, 1)).reshape(B, C, H, W)


def init_params(key, C):
    C8 = max(C // 8, 1)
    k1, k2, k3, k4, k5, k6 = jax.random.split(key, 6)
    scale = 0.1
    return {
        # 1x1 conv weights stored (C_in, C_out) (transposed PyTorch layout)
        "wq": scale * jax.random.normal(k1, (C, C8), jnp.float32),
        "bq": scale * jax.random.normal(k2, (1, C8), jnp.float32),
        "wk": scale * jax.random.normal(k3, (C, C8), jnp.float32),
        "bk": scale * jax.random.normal(k4, (1, C8), jnp.float32),
        "wv": scale * jax.random.normal(k5, (C, C), jnp.float32),
        "bv": scale * jax.random.normal(k6, (1, C), jnp.float32),
        # Module __init__ sets gamma = 0; nonzero here so the attention path
        # actually contributes under test.
        "gamma": jnp.array([0.5], jnp.float32),
    }


if __name__ == "__main__":
    B, C, H, W = 2, 16, 12, 12        # N = 144 -> exercises the padding/mask path
    key = jax.random.PRNGKey(0)
    kx, kp = jax.random.split(key)
    x = jax.random.normal(kx, (B, C, H, W), jnp.float32)
    params = init_params(kp, C)

    out = jax.block_until_ready(pam_forward(x, params))
    ref = jax.block_until_ready(pam_reference(x, params))

    assert out.shape == (B, C, H, W)
    # bf16 MXU inputs (f32 accumulation) + approx reciprocal -> tolerance
    # looser than a pure-f32 check; observed error is ~1e-3.
    err = jnp.max(jnp.abs(out - ref))
    assert jnp.allclose(out, ref, atol=2e-2, rtol=2e-2), f"mismatch vs reference, max abs err={err}"
    print("KERNEL_OK")
</pallas_src>

<mosaic_0001>
module attributes {stable_mosaic.version = 11 : i64} {
  func.func @qkv_proj_kernel(%arg0: i32, %arg1: i32, %arg2: memref<1x128x128xf32, #tpu.memory_space<vmem>>, %arg3: memref<128x384xf32, #tpu.memory_space<vmem>>, %arg4: memref<1x384xf32, #tpu.memory_space<vmem>>, %arg5: memref<1x128x128xbf16, #tpu.memory_space<vmem>>, %arg6: memref<1x128x128xbf16, #tpu.memory_space<vmem>>, %arg7: memref<1x128x128xbf16, #tpu.memory_space<vmem>>) attributes {dimension_semantics = [#tpu.dimension_semantics<parallel>, #tpu.dimension_semantics<parallel>], iteration_bounds = array<i64: 2, 2>, scalar_prefetch = 0 : i64, scratch_operands = 0 : i64, tpu.core_type = #tpu.core_type<tc>, window_params = [{transform_indices = @transform_0, window_bounds = array<i64: 1, 128, 128>}, {pipeline_mode = #tpu.pipeline_mode<synchronous>, transform_indices = @transform_1, window_bounds = array<i64: 128, 384>}, {pipeline_mode = #tpu.pipeline_mode<synchronous>, transform_indices = @transform_2, window_bounds = array<i64: 1, 384>}, {transform_indices = @transform_3, window_bounds = array<i64: 1, 128, 128>}, {transform_indices = @transform_4, window_bounds = array<i64: 1, 128, 128>}, {transform_indices = @transform_5, window_bounds = array<i64: 1, 128, 128>}]} {
    %c0 = arith.constant 0 : index
    %c0_0 = arith.constant 0 : index
    %c0_1 = arith.constant 0 : index
    %0 = vector.load %arg2[%c0, %c0_0, %c0_1] : memref<1x128x128xf32, #tpu.memory_space<vmem>>, vector<1x128x128xf32>
    %1 = vector.shape_cast %0 : vector<1x128x128xf32> to vector<128x128xf32>
    %2 = arith.truncf %1 : vector<128x128xf32> to vector<128x128xbf16>
    %c0_2 = arith.constant 0 : index
    %c0_3 = arith.constant 0 : index
    %3 = vector.load %arg3[%c0_2, %c0_3] : memref<128x384xf32, #tpu.memory_space<vmem>>, vector<128x384xf32>
    %4 = arith.truncf %3 : vector<128x384xf32> to vector<128x384xbf16>
    %cst = arith.constant dense<0.000000e+00> : vector<128x384xf32>
    %5 = tpu.matmul %2, %4, %cst {dimension_numbers = #tpu.dot_dimension_numbers<[1], [0], [0], [1], [0, 0, 1, 1], [], []>} : vector<128x128xbf16>, vector<128x384xbf16>, vector<128x384xf32> -> vector<128x384xf32>
    %c0_4 = arith.constant 0 : index
    %c0_5 = arith.constant 0 : index
    %6 = vector.load %arg4[%c0_4, %c0_5] : memref<1x384xf32, #tpu.memory_space<vmem>>, vector<1x384xf32>
    %7 = vector.broadcast %6 : vector<1x384xf32> to vector<128x384xf32>
    %8 = arith.addf %5, %7 : vector<128x384xf32>
    %9 = vector.extract_strided_slice %8 {offsets = [0, 0], sizes = [128, 128], strides = [1, 1]} : vector<128x384xf32> to vector<128x128xf32>
    %10 = arith.truncf %9 : vector<128x128xf32> to vector<128x128xbf16>
    %c0_6 = arith.constant 0 : index
    %c0_7 = arith.constant 0 : index
    %c0_8 = arith.constant 0 : index
    %11 = vector.load %arg5[%c0_6, %c0_7, %c0_8] : memref<1x128x128xbf16, #tpu.memory_space<vmem>>, vector<1x128x128xbf16>
    %12 = vector.shape_cast %11 : vector<1x128x128xbf16> to vector<128x128xbf16>
    %13 = vector.shape_cast %10 : vector<128x128xbf16> to vector<1x128x128xbf16>
    tpu.vector_store %arg5[%c0_6, %c0_7, %c0_8], %13 {strides = array<i32>} : memref<1x128x128xbf16, #tpu.memory_space<vmem>>, vector<1x128x128xbf16>,
    %14 = vector.extract_strided_slice %8 {offsets = [0, 128], sizes = [128, 128], strides = [1, 1]} : vector<128x384xf32> to vector<128x128xf32>
    %15 = arith.truncf %14 : vector<128x128xf32> to vector<128x128xbf16>
    %c0_9 = arith.constant 0 : index
    %c0_10 = arith.constant 0 : index
    %c0_11 = arith.constant 0 : index
    %16 = vector.load %arg6[%c0_9, %c0_10, %c0_11] : memref<1x128x128xbf16, #tpu.memory_space<vmem>>, vector<1x128x128xbf16>
    %17 = vector.shape_cast %16 : vector<1x128x128xbf16> to vector<128x128xbf16>
    %18 = vector.shape_cast %15 : vector<128x128xbf16> to vector<1x128x128xbf16>
    tpu.vector_store %arg6[%c0_9, %c0_10, %c0_11], %18 {strides = array<i32>} : memref<1x128x128xbf16, #tpu.memory_space<vmem>>, vector<1x128x128xbf16>,
    %19 = vector.extract_strided_slice %8 {offsets = [0, 256], sizes = [128, 128], strides = [1, 1]} : vector<128x384xf32> to vector<128x128xf32>
    %20 = arith.truncf %19 : vector<128x128xf32> to vector<128x128xbf16>
    %c0_12 = arith.constant 0 : index
    %c0_13 = arith.constant 0 : index
    %c0_14 = arith.constant 0 : index
    %21 = vector.load %arg7[%c0_12, %c0_13, %c0_14] : memref<1x128x128xbf16, #tpu.memory_space<vmem>>, vector<1x128x128xbf16>
    %22 = vector.shape_cast %21 : vector<1x128x128xbf16> to vector<128x128xbf16>
    %23 = vector.shape_cast %20 : vector<128x128xbf16> to vector<1x128x128xbf16>
    tpu.vector_store %arg7[%c0_12, %c0_13, %c0_14], %23 {strides = array<i32>} : memref<1x128x128xbf16, #tpu.memory_space<vmem>>, vector<1x128x128xbf16>,
    return
  }
  func.func @transform_0(%arg0: i32, %arg1: i32) -> (i32, i32, i32) {
    %c0_i32 = arith.constant 0 : i32
    %c0_i32_0 = arith.constant 0 : i32
    return %arg0, %arg1, %c0_i32 : i32, i32, i32
  }
  func.func @transform_1(%arg0: i32, %arg1: i32) -> (i32, i32) {
    %c0_i32 = arith.constant 0 : i32
    %c0_i32_0 = arith.constant 0 : i32
    %c0_i32_1 = arith.constant 0 : i32
    return %c0_i32, %c0_i32_0 : i32, i32
  }
  func.func @transform_2(%arg0: i32, %arg1: i32) -> (i32, i32) {
    %c0_i32 = arith.constant 0 : i32
    %c0_i32_0 = arith.constant 0 : i32
    %c0_i32_1 = arith.constant 0 : i32
    return %c0_i32, %c0_i32_0 : i32, i32
  }
  func.func @transform_3(%arg0: i32, %arg1: i32) -> (i32, i32, i32) {
    %c0_i32 = arith.constant 0 : i32
    %c0_i32_0 = arith.constant 0 : i32
    return %arg0, %arg1, %c0_i32 : i32, i32, i32
  }
  func.func @transform_4(%arg0: i32, %arg1: i32) -> (i32, i32, i32) {
    %c0_i32 = arith.constant 0 : i32
    %c0_i32_0 = arith.constant 0 : i32
    return %arg0, %arg1, %c0_i32 : i32, i32, i32
  }
  func.func @transform_5(%arg0: i32, %arg1: i32) -> (i32, i32, i32) {
    %c0_i32 = arith.constant 0 : i32
    %c0_i32_0 = arith.constant 0 : i32
    return %arg0, %arg1, %c0_i32 : i32, i32, i32
  }
}

</mosaic_0001>

<bundles_post_ra>
// kernel: tpu_custom_call.1
= control target key start
LH: loop header
LB: loop body
LE: loop exit
PB: predicated region body
PF: predicated region fallthrough
CT: control target
= control target key end

     0   :  { %s2220_s0 = inlined_call_operand.hbm [shape: f32[2,256,128], index: 0, kind: input, shape index: {}]   ;;  %s2221_s1 = inlined_call_operand.hbm [shape: f32[128,384], index: 1, kind: input, shape index: {}]   ;;  %s2222_s2 = inlined_call_operand.vmem [shape: f32[1,384], index: 2, kind: input, shape index: {}]   ;;  %s2223_s3 = inlined_call_operand.hbm [shape: bf16[2,256,128], index: 3, kind: output, shape index: {0}]   ;;  %s2224_s4 = inlined_call_operand.hbm [shape: bf16[2,256,128], index: 4, kind: output, shape index: {1}]   ;;  %s2225_s5 = inlined_call_operand.hbm [shape: bf16[2,256,128], index: 5, kind: output, shape index: {2}]  }
   0x1   :  { %2236 = sst [smem:[#allocation20_spill]] %s2221_s1 }
   0x2   :  { %2237 = sst [smem:[#allocation21_spill]] %s2225_s5 }
   0x3   :  { %11 = vsyncpa [#allocation3], 0 }
   0x4   :  { %13 = vsyncpa [#allocation3 + $0x1], 0 }
   0x5   :  { %14 = vsyncpa [#allocation6], 0 }
   0x6   :  { %15 = vsyncpa [#allocation4], 0 }
   0x7   :  { %17 = vsyncpa [#allocation4 + $0x1], 0 }
   0x8   :  { %18 = vsyncpa [#allocation9], 0 }
   0x9   :  { %20 = vsyncpa [#allocation9 + $0x1], 0  ;;  %s1779_s18 = smov 0   ;;  %s1781_s19 = smov 0  }
   0xa   :  { %s1783_s20 = smov 0   ;;  %s1785_s21 = smov 0  }
   0xb   :  { %s1787_s22 = smov 0   ;;  %s1789_s23 = smov 0  }
   0xc   :  { %s1791_s24 = smov 0   ;;  %s1793_s25 = smov 0  }
   0xd LB: > { %2238 = sst [smem:[#allocation15_spill]] %s1707_s18  ;;  %s1820_s26 = sadd.s32 4294967295, %s1735_s25   ;;  %s1735_s25 = sphi %s1793_s25, %s26_s25   ;;  %s1731_s24 = sphi %s1791_s24, %s2268_s24   ;;  %s1727_s23 = sphi %s1789_s23, %s2262_s23   ;;  %s1723_s22 = sphi %s1787_s22, %s2267_s22   ;;  %s1719_s21 = sphi %s1785_s21, %s2261_s21   ;;  %s1715_s20 = sphi %s1783_s20, %s2266_s20   ;;  %s1711_s19 = sphi %s1781_s19, %s2265_s19   ;;  %s1707_s18 = sphi %s1779_s18, %s2264_s18  }
   0xe   : > { %2239 = sst [smem:[#allocation16_spill]] %s1727_s23  ;;  %s2229_s27 = sadd.s32 4294967294, %s1735_s25  }
   0xf   : > { %p60_p0 = scmp.ne.s32.totalorder %s1711_s19, %s1707_s18  ;;  %p2226_p1 = scmp.eq.s32.totalorder %s1820_s26, 0 }
  0x10   : > { %p134_p3 = scmp.eq.s32.totalorder %s2229_s27, 3  ;;  %p1097_p5 = scmp.ge.s32.totalorder %s1735_s25, 1 }
  0x11   : > { %p1831_p4 = por %p2226_p1, %p60_p0  ;;  %p197_p7 = scmp.lt.s32.totalorder %s1735_s25, 5 }
  0x12   : > { %p1836_p6 = por %p134_p3, %p60_p0  ;;  %s1737_s6 = smov [#allocation5]  }
  0x13   : > { %s2240_s28 = scalar_select %p1831_p4, 1, 0 }
  0x14   : > { %s2241_s29 = scalar_select %p1836_p6, 1, 0 }
  0x15   : > { %p1841_p8 = pnand %p1097_p5, %p197_p7  ;;  %s209_s7 = sshll.u32 %s1737_s6, 4  ;;  %s210_s7 = int_to_ptr.vmem [resolvable:$true] %s209_s7 }
  0x16   : > { %2242 = sst [smem:[#allocation17_spill]] %s2241_s29  ;;  %s2245_s1 = sld [smem:[#allocation20_spill]] }
  0x17   : > { %s2243_s30 = scalar_select %p1841_p8, 1, 0 }
  0x18   : > { %p1421_p9 = pneg %p1841_p8 }
  0x1a   : > { %p1849_p10 = pnand %p1421_p9, %p2226_p1 }
  0x1c   : > { %s1515_s11 = scalar_lea.hbm %s2245_s1, 6144  ;;  %p1517_p12 = pneg %p1849_p10 }
  0x1d   : > { %p1516_p11 = scmp.ne.s32.totalorder %s2245_s1, %s1515_s11  ;;  %p1522_p3 = scmp.lt.u32.totalorder %s1515_s11, %s2245_s1 }
  0x1f   : > { %p1518_p13 = pnand %p1517_p12, %p1516_p11 }
  0x21   : > { %p1519_p0 = pneg %p1518_p13 }
  0x23   : > { %p1524_p5 = pnand %p1522_p3, %p1519_p0 }
  0x25   : > { %1527 = shalt.err (!%p1524_p5)
}
  0x26   : > { %s1528_s16 = scalar_lea.vmem %s210_s7, 6144  ;;  %p1536_p2 = scmp.lt.s32.totalorder %s210_s7, %s210_s7 }
  0x27   : > { %p1529_p7 = scmp.ne.s32.totalorder %s210_s7, %s1528_s16  ;;  %p1537_p6 = scmp.lt.s32.totalorder %s1528_s16, %s1528_s16 }
  0x29   : > { %p1531_p9 = pnand %p1529_p7, %p1517_p12  ;;  %p1538_p4 = por %p1537_p6, %p1536_p2 }
  0x2b   : > { %p1532_p1 = pneg %p1531_p9 }
  0x2d   : > { %p1539_p8 = pnand %p1538_p4, %p1532_p1 }
  0x2f   : > { %1542 = shalt.err (!%p1539_p8)
}
  0x30   : > { %s1738_s17 = smov 384   ;;  %s1739_s6 = smov 24  }
  0x31   : > { %1424 = dma.hbm_to_vmem [thread:$0]  (!%p1849_p10), %s2245_s1, 6144, %s210_s7, [#allocation6], %s1738_s17, %s1738_s17, %s1739_s6  }
  0x32   : > { %s35_s11 = sadd.s32 1, %s1727_s23  ;;  %s38_s12 = sadd.s32 1, %s1731_s24 }
  0x33   : > { %p36_p1 = scmp.ge.s32.totalorder %s35_s11, 2  ;;  %s47_s13 = sadd.s32 1, %s1715_s20 }
  0x34   : > { %p54_p2 = scmp.ne.s32.totalorder %s1715_s20, %s1711_s19  ;;  %p55_p4 = scmp.eq.s32.totalorder %s1735_s25, 0 }
  0x35   : > { %s2270_s11 = smov (%p36_p1, %s35_s11), 0  ;;  %s2272_s12 = smov (!%p36_p1, %s38_s12), %s1731_s24 }
  0x36   : > { %2246 = sst [smem:[#allocation18_spill]] %s2270_s11  ;;  %s43_s14 = ssub.s32 %s1727_s23, %s2270_s11 }
  0x37   : > { %p40_p6 = scmp.ge.s32.totalorder %s2272_s12, 2  ;;  %p2247_p8 = scmp.eq.s32.totalorder %s1820_s26, 3 }
  0x38   : > { %p1886_p10 = por %p55_p4, %p54_p2  ;;  %p1440_p12 = scmp.lt.s32.totalorder %s1735_s25, 4 }
  0x39   : > { %p1882_p11 = por %p2247_p8, %p54_p2  ;;  %s2274_s12 = smov (%p40_p6, %s2272_s12), 0 }
  0x3a   : > { %2250 = sst [smem:[#allocation19_spill]] %s2274_s12  ;;  %s226_s15 = sand.u32 1, %s1715_s20  }
  0x3b   : > { %s1101_s16 = sshll.u32 %s1727_s23, 4  ;;  %s42_s17 = ssub.s32 %s1731_s24, %s2274_s12 }
  0x3c   : > { %s44_s6 = sor.u32 %s43_s14, %s42_s17  ;;  %s1100_s9 = sshll.u32 %s226_s15, 7 }
  0x3d   : > { %p45_p13 = scmp.eq.s32.totalorder %s44_s6, 0  ;;  %s1102_s10 = sshll.u32 %s1731_s24, 5 }
  0x3e   : > { %s230_s27 = scalar_lea.vmem [#allocation2], %s1100_s9  ;;  %s236_s29 = sadd.s32 %s1102_s10, %s1101_s16 }
  0x3f   : > { %s239_s1 = sshll.u32 %s230_s27, 4  ;;  %s1103_s18 = sshll.u32 %s236_s29, 7  ;;  %s1901_s1 = int_to_ptr.vmem [resolvable:$true] %s239_s1 }
  0x40   : > { %s1899_s11 = scalar_select %p45_p13, %s1715_s20, %s47_s13  }
  0x41   : > { %p1907_p0 = pnand %p1440_p12, %p1886_p10  ;;  %s1914_s14 = scalar_lea.hbm %s2220_s0, %s1103_s18 }
  0x42   : > { %s1916_s27 = scalar_lea.sflag [#allocation3], %s226_s15  ;;  %s1543_s29 = scalar_lea.hbm %s1914_s14, 2048 }
  0x43   : > { %p1544_p3 = scmp.ne.s32.totalorder %s1914_s14, %s1543_s29  ;;  %p1545_p5 = pneg %p1907_p0 }
  0x44   : > { %s1548_s12 = scalar_lea.hbm %s2220_s0, 8192  ;;  %p1549_p1 = scmp.lt.u32.totalorder %s1914_s14, %s2220_s0 }
  0x45   : > { %p1546_p7 = pnand %p1545_p5, %p1544_p3  ;;  %p1550_p2 = scmp.lt.u32.totalorder %s1548_s12, %s1543_s29 }
  0x46   : > { %p1552_p6 = scmp.lt.u32.totalorder %s1543_s29, %s1914_s14 }
  0x47   : > { %p1547_p9 = pneg %p1546_p7  ;;  %p1551_p4 = por %p1550_p2, %p1549_p1 }
  0x49   : > { %p1553_p8 = por %p1552_p6, %p1551_p4 }
  0x4b   : > { %p1554_p10 = pnand %p1553_p8, %p1547_p9 }
  0x4d   : > { %1557 = shalt.err (!%p1554_p10)
}
  0x4e   : > { %s1558_s15 = scalar_lea.vmem %s1901_s1, 2048  ;;  %s1740_s16 = smov [#allocation2]  }
  0x4f   : > { %p1559_p12 = scmp.ne.s32.totalorder %s1901_s1, %s1558_s15  ;;  %s1563_s17 = sshll.u32 %s1740_s16, 4  ;;  %s1564_s17 = int_to_ptr.vmem [resolvable:$false] %s1563_s17 }
  0x50   : > { %s1565_s6 = scalar_lea.vmem %s1564_s17, 4096  ;;  %p1566_p7 = scmp.lt.s32.totalorder %s1901_s1, %s1564_s17 }
  0x51   : > { %p1561_p13 = pnand %p1559_p12, %p1545_p5  ;;  %p1567_p1 = scmp.lt.s32.totalorder %s1565_s6, %s1558_s15 }
  0x53   : > { %p1562_p3 = pneg %p1561_p13  ;;  %p1568_p2 = por %p1567_p1, %p1566_p7 }
  0x55   : > { %p1569_p4 = pnand %p1568_p2, %p1562_p3 }
  0x57   : > { %1572 = shalt.err (!%p1569_p4)
}
  0x58   : > { %s1741_s9 = smov 128   ;;  %s1742_s10 = smov 8  }
  0x59   : > { %1428 = dma.hbm_to_vmem [thread:$0]  (!%p1907_p0), %s1914_s14, 2048, %s1901_s1, %s1916_s27, %s1741_s9, %s1741_s9, %s1742_s10  }
  0x5a   : > { %p2252_p5 = scmp.ne.s32.totalorder %s2243_s30, 0 }
  0x5b   : > { %s1947_s29 = sand.u32 (!%p2252_p5), 1, %s1711_s19   ;;  %p2253_p9 = scmp.ne.s32.totalorder (!%p2252_p5), %s2240_s28, 0 }
  0x5c   : > { %251 = sbr.rel (%p2252_p5) target bundleno = 473 (0x1d9), region = 32  ;;  %s1105_s13 = sshll.u32 (!%p2252_p5), %s1947_s29, 7 }
  0x5d   : > { %s254_s23 = scalar_lea.sflag (!%p2252_p5), [#allocation3], %s1947_s29  ;;  %s1951_s12 = scalar_lea.vmem (!%p2252_p5), [#allocation2], %s1105_s13 }
  0x63   : > { %1690 = dma.done.wait (%p2253_p9), %s254_s23, 2048  }
  0x64   : > { %1692 = vsyncadd (%p2253_p9), %s254_s23, 4294965248  ;;  %p2254_p0 = scmp.eq.s32.totalorder %s1820_s26, 0 }
  0x66   : > { %1694 = dma.done.wait (%p2254_p0), [#allocation6], 6144   ;;  %p2255_p6 = pmov %p2254_p0 }
  0x67   : > { %v1743_v0 = vmov 0   ;;  %v328_v1 = vld [vmem:[#allocation5 + $0x8] sm:$0xff]  ;;  %v331_v2 = vld [vmem:[#allocation5 + $0x20] sm:$0xff]  ;;  %v330_v5 = vld [vmem:[#allocation5 + $0x18] sm:$0xff]  ;;  %s1997_s28 = sshll.u32 %s1947_s29, 6  ;;  %s1161_s18 = sshll.u32 %s1719_s21, 4 }
  0x68   : > { %1696 = vsyncadd (%p2255_p6), [#allocation6], 4294961152  ;;  %448 = vmatprep.mubr.bf16.mxu0 %v1743_v0  ;;  %v327_v3 = vld [vmem:[#allocation5] sm:$0xff]  ;;  %v376_v4 = vpack.c.bf16 %v331_v2, %v328_v1  ;;  %v334_v6 = vld [vmem:[#allocation5 + $0x38] sm:$0xff]  ;;  %s2004_s30 = scalar_lea.vmem [#allocation7], %s1997_s28  ;;  %s2008_s14 = scalar_lea.vmem [#allocation8], %s1997_s28 }
  0x69   : > { %v337_v7 = vld [vmem:[#allocation5 + $0x50] sm:$0xff]  ;;  %v375_v8 = vpack.c.bf16 %v330_v5, %v327_v3  ;;  %v336_v11 = vld [vmem:[#allocation5 + $0x48] sm:$0xff]  ;;  %v343_v13 = vld [vmem:[#allocation5 + $0x80] sm:$0xff]  ;;  %s2024_s27 = scalar_lea.vmem [#allocation10], %s1997_s28  ;;  %s1162_s7 = sshll.u32 %s1723_s22, 5 }
  0x6a   : > { %v379_v9 = vpack.c.bf16 %v337_v7, %v334_v6  ;;  %v333_v10 = vld [vmem:[#allocation5 + $0x30] sm:$0xff]  ;;  %v340_v12 = vld [vmem:[#allocation5 + $0x68] sm:$0xff]  ;;  %416 = vmatprep.subr.bf16.mxu0 %v376_v4  ;;  %v339_v16 = vld [vmem:[#allocation5 + $0x60] sm:$0xff]  ;;  %s892_s15 = sshll.u32 %s2004_s30, 4  ;;  %s910_s16 = sshll.u32 %s2008_s14, 4  ;;  %s2080_s15 = int_to_ptr.vmem [resolvable:$true] %s892_s15  ;;  %s2082_s16 = int_to_ptr.vmem [resolvable:$true] %s910_s16 }
  0x6b   : > { %417 = vmatpush1.bf16.msra.mxu0 %v375_v8  ;;  %v378_v14 = vpack.c.bf16 %v336_v11, %v333_v10  ;;  %v382_v15 = vpack.c.bf16 %v343_v13, %v340_v12  ;;  %v342_v17 = vld [vmem:[#allocation5 + $0x78] sm:$0xff]  ;;  %v349_v19 = vld [vmem:[#allocation5 + $0xb0] sm:$0xff]  ;;  %v348_v23 = vld [vmem:[#allocation5 + $0xa8] sm:$0xff]  ;;  %s889_s17 = sadd.s32 %s1162_s7, %s1161_s18  ;;  %s928_s21 = sshll.u32 %s2024_s27, 4  ;;  %s2100_s21 = int_to_ptr.vmem [resolvable:$true] %s928_s21 }
  0x6c   : > { %418 = vmatprep.subr.bf16.mxu0 %v379_v9  ;;  %v346_v18 = vld [vmem:[#allocation5 + $0x98] sm:$0xff]  ;;  %v381_v20 = vpack.c.bf16 %v342_v17, %v339_v16  ;;  %v345_v22 = vld [vmem:[#allocation5 + $0x90] sm:$0xff]  ;;  %v352_v24 = vld [vmem:[#allocation5 + $0xc8] sm:$0xff]  ;;  %s1163_s6 = sshll.u32 %s889_s17, 6  ;;  %s871_s22 = sand.u32 1, %s1820_s26  }
  0x6d   : > { %v385_v21 = vpack.c.bf16 %v349_v19, %v346_v18  ;;  %v355_v25 = vld [vmem:[#allocation5 + $0xe0] sm:$0xff]  ;;  %v329_v26 = vld [vmem:[#allocation5 + $0x10] sm:$0xff]  ;;  %v332_v27 = vld [vmem:[#allocation5 + $0x28] sm:$0xff]  ;;  %v384_v30 = vpack.c.bf16 %v348_v23, %v345_v22  ;;  %s2093_s13 = scalar_lea.hbm %s2223_s3, %s1163_s6  ;;  %s2098_s1 = scalar_lea.hbm %s2224_s4, %s1163_s6 }
  0x6e   : > { %v303_v28 = vld [vmem:[%s1951_s12] sm:$0xff]  ;;  %v304_v29 = vld [vmem:[%s1951_s12 + $0x8] sm:$0xff]  ;;  %v377_v32 = vpack.c.bf16 %v332_v27, %v329_v26  ;;  %v338_v35 = vld [vmem:[#allocation5 + $0x58] sm:$0xff]  ;;  %v388_v36 = vpack.c.bf16 %v355_v25, %v352_v24  ;;  %s867_s7 = scalar_lea.sflag [#allocation4], %s1947_s29  ;;  %s1573_s17 = scalar_lea.vmem %s2080_s15, 1024 }
  0x6f   : > { %419 = vmatpush1.bf16.msra.mxu0 %v378_v14  ;;  %v351_v31 = vld [vmem:[#allocation5 + $0xc0] sm:$0xff]  ;;  %v1964_v33 = vpack.c.bf16 %v304_v29, %v303_v28  ;;  %v354_v37 = vld [vmem:[#allocation5 + $0xd8] sm:$0xff]  ;;  %v341_v39 = vld [vmem:[#allocation5 + $0x70] sm:$0xff]  ;;  %p1574_p8 = scmp.ne.s32.totalorder %s2080_s15, %s1573_s17  ;;  %s1744_s9 = smov [#allocation7]  }
  0x70   : > { %420 = vmatprep.subr.bf16.mxu0 %v382_v15  ;;  %v335_v34 = vld [vmem:[#allocation5 + $0x40] sm:$0xff]  ;;  %v344_v40 = vld [vmem:[#allocation5 + $0x88] sm:$0xff]  ;;  %v358_v41 = vld [vmem:[#allocation5 + $0xf8] sm:$0xff]  ;;  %1377 = vmatprep.subr.bf16.mxu1 %v377_v32  ;;  %v387_v43 = vpack.c.bf16 %v354_v37, %v351_v31  ;;  %s1577_s10 = sshll.u32 %s1744_s9, 4  ;;  %s1578_s10 = int_to_ptr.vmem [resolvable:$false] %s1577_s10 }
  0x71   : > { %v380_v38 = vpack.c.bf16 %v338_v35, %v335_v34  ;;  %v361_v42 = vld [vmem:[#allocation5 + $0x110] sm:$0xff]  ;;  %1393 = vmatprep.mubr.bf16.mxu1 %v1964_v33  ;;  %1378 = vmatpush3.bf16.msra.mxu1 %v377_v32  ;;  %v383_v45 = vpack.c.bf16 %v344_v40, %v341_v39  ;;  %v360_v47 = vld [vmem:[#allocation5 + $0x108] sm:$0xff]  ;;  %v347_v48 = vld [vmem:[#allocation5 + $0xa0] sm:$0xff]  ;;  %v401_v34 = vlaneseq  ;;  %p1575_p10 = pnand %p1574_p8, %p1882_p11  ;;  %s1579_s23 = scalar_lea.vmem %s1578_s10, 2048 }
  0x72   : > { %v357_v44 = vld [vmem:[#allocation5 + $0xf0] sm:$0xff]  ;;  %v391_v46 = vpack.c.bf16 %v361_v42, %v358_v41  ;;  %v350_v49 = vld [vmem:[#allocation5 + $0xb8] sm:$0xff]  ;;  %v364_v50 = vld [vmem:[#allocation5 + $0x128] sm:$0xff]  ;;  %p1580_p13 = scmp.lt.s32.totalorder %s2080_s15, %s1578_s10  ;;  %p1581_p3 = scmp.lt.s32.totalorder %s1579_s23, %s1573_s17 }
  0x73   : > { %421 = vmatpush1.bf16.msra.mxu0 %v381_v20  ;;  %1379 = vmatprep.subr.bf16.mxu1 %v380_v38  ;;  %v367_v51 = vld [vmem:[#allocation5 + $0x140] sm:$0xff]  ;;  %v390_v52 = vpack.c.bf16 %v360_v47, %v357_v44  ;;  %v386_v54 = vpack.c.bf16 %v350_v49, %v347_v48  ;;  %v366_v56 = vld [vmem:[#allocation5 + $0x138] sm:$0xff]  ;;  %v353_v57 = vld [vmem:[#allocation5 + $0xd0] sm:$0xff]  ;;  %v402_v35 = vshrl.u32 %v401_v34, 7  ;;  %p1576_p12 = pneg %p1575_p10 }
  0x74   : > { %422 = vmatprep.subr.bf16.mxu0 %v385_v21  ;;  %v363_v53 = vld [vmem:[#allocation5 + $0x120] sm:$0xff]  ;;  %v394_v55 = vpack.c.bf16 %v367_v51, %v364_v50  ;;  %v356_v58 = vld [vmem:[#allocation5 + $0xe8] sm:$0xff]  ;;  %v370_v59 = vld [vmem:[#allocation5 + $0x158] sm:$0xff]  ;;  %p1582_p7 = por %p1581_p3, %p1580_p13 }
  0x75   : > { %1380 = vmatpush3.bf16.msra.mxu1 %v380_v38  ;;  %v373_v60 = vld [vmem:[#allocation5 + $0x170] sm:$0xff]  ;;  %v393_v61 = vpack.c.bf16 %v366_v56, %v363_v53  ;;  %v389_v63 = vpack.c.bf16 %v356_v58, %v353_v57  ;;  %v372_v2 = vld [vmem:[#allocation5 + $0x168] sm:$0xff]  ;;  %v359_v3 = vld [vmem:[#allocation5 + $0x100] sm:$0xff]  ;;  %v407_v38 = vsub.s32 1, %v402_v35  ;;  %v411_v48 = vsub.s32 2, %v402_v35 }
  0x76   : > { %1381 = vmatprep.subr.bf16.mxu1 %v383_v45  ;;  %v369_v62 = vld [vmem:[#allocation5 + $0x150] sm:$0xff]  ;;  %v397_v1 = vpack.c.bf16 %v373_v60, %v370_v59  ;;  %v362_v4 = vld [vmem:[#allocation5 + $0x118] sm:$0xff]  ;;  %v368_v8 = vld [vmem:[#allocation5 + $0x148] sm:$0xff]  ;;  %p1583_p1 = pnand %p1582_p7, %p1576_p12 }
  0x77   : > { %423 = vmatpush1.bf16.msra.mxu0 %v384_v30  ;;  %v396_v5 = vpack.c.bf16 %v372_v2, %v369_v62  ;;  %v392_v6 = vpack.c.bf16 %v362_v4, %v359_v3  ;;  %v365_v7 = vld [vmem:[#allocation5 + $0x130] sm:$0xff]  ;;  %v371_v10 = vld [vmem:[#allocation5 + $0x160] sm:$0xff]  ;;  %v374_v11 = vld [vmem:[#allocation5 + $0x178] sm:$0xff] }
  0x78   : > { %424 = vmatprep.subr.bf16.mxu0 %v388_v36  ;;  %v395_v9 = vpack.c.bf16 %v368_v8, %v365_v7  ;;  %v305_v12 = vld [vmem:[%s1951_s12 + $0x10] sm:$0xff]  ;;  %v306_v13 = vld [vmem:[%s1951_s12 + $0x18] sm:$0xff]  ;;  %v398_v14 = vpack.c.bf16 %v374_v11, %v371_v10  ;;  %v307_v16 = vld [vmem:[%s1951_s12 + $0x20] sm:$0xff]  ;;  %v403_v36 = vsub.s32 0, %v402_v35 }
  0x79   : > { %1382 = vmatpush3.bf16.msra.mxu1 %v383_v45  ;;  %v320_v15 = vpack.c.bf16 %v306_v13, %v305_v12  ;;  %v308_v17 = vld [vmem:[%s1951_s12 + $0x28] sm:$0xff]  ;;  %v309_v19 = vld [vmem:[%s1951_s12 + $0x30] sm:$0xff]  ;;  %v310_v20 = vld [vmem:[%s1951_s12 + $0x38] sm:$0xff] }
  0x7a   : > { %1383 = vmatprep.subr.bf16.mxu1 %v386_v54  ;;  %v321_v18 = vpack.c.bf16 %v308_v17, %v307_v16  ;;  %v311_v21 = vld [vmem:[%s1951_s12 + $0x40] sm:$0xff]  ;;  %v312_v22 = vld [vmem:[%s1951_s12 + $0x48] sm:$0xff]  ;;  %v322_v23 = vpack.c.bf16 %v310_v20, %v309_v19  ;;  %v313_v25 = vld [vmem:[%s1951_s12 + $0x50] sm:$0xff] }
  0x7b   : > { %425 = vmatpush1.bf16.msra.mxu0 %v387_v43  ;;  %v323_v24 = vpack.c.bf16 %v312_v22, %v311_v21  ;;  %v314_v26 = vld [vmem:[%s1951_s12 + $0x58] sm:$0xff]  ;;  %v315_v27 = vld [vmem:[%s1951_s12 + $0x60] sm:$0xff]  ;;  %v316_v28 = vld [vmem:[%s1951_s12 + $0x68] sm:$0xff] }
  0x7c   : > { %426 = vmatprep.subr.bf16.mxu0 %v391_v46  ;;  %v324_v29 = vpack.c.bf16 %v314_v26, %v313_v25  ;;  %v325_v30 = vpack.c.bf16 %v316_v28, %v315_v27  ;;  %v317_v31 = vld [vmem:[%s1951_s12 + $0x70] sm:$0xff]  ;;  %v318_v32 = vld [vmem:[%s1951_s12 + $0x78] sm:$0xff]  ;;  %v399_v37 = vld [vmem:[%s2222_s2] sm:$0x7] }
  0x7d   : > { %1384 = vmatpush3.bf16.msra.mxu1 %v386_v54  ;;  %v1992_v39 = vrot.slane %v399_v37, %v403_v36  ;;  %v1994_v41 = vrot.slane %v399_v37, %v407_v38 }
  0x7e   : > { %1385 = vmatprep.subr.bf16.mxu1 %v389_v63 }
  0x7f   : > { %427 = vmatpush1.bf16.msra.mxu0 %v390_v52  ;;  %v2011_v52 = vrot.slane %v399_v37, %v411_v48 }
  0x80   : > { %428 = vmatprep.subr.bf16.mxu0 %v394_v55 }
  0x81   : > { %1386 = vmatpush3.bf16.msra.mxu1 %v389_v63 }
  0x82   : > { %1387 = vmatprep.subr.bf16.mxu1 %v392_v6 }
  0x83   : > { %429 = vmatpush1.bf16.msra.mxu0 %v393_v61 }
  0x84   : > { %430 = vmatprep.subr.bf16.mxu0 %v397_v1 }
  0x85   : > { %1388 = vmatpush3.bf16.msra.mxu1 %v392_v6 }
  0x86   : > { %1389 = vmatprep.subr.bf16.mxu1 %v395_v9 }
  0x87   : > { %431 = vmatpush1.bf16.msra.mxu0 %v396_v5 }
  0x89   : > { %1390 = vmatpush3.bf16.msra.mxu1 %v395_v9 }
  0x8a   : > { %449 = vmatmul.mubr.bf16.vlgmr.msra.gmra.mrb[0].mxu0 %v1964_v33  ;;  %1391 = vmatprep.subr.bf16.mxu1 %v398_v14  ;;  %v326_v33 = vpack.c.bf16 %v318_v32, %v317_v31 }
  0x8b   : > { %458 = vmatprep.mubr.bf16.mxu0 %v1743_v0 }
  0x8d   : > { %1392 = vmatpush3.bf16.msra.mxu1 %v398_v14 }
  0x90   : > { %1394 = vmatmul.mubr.bf16.vlgmr.msra.gmra.mrb[0].mxu1 %v320_v15 }
  0x91   : > { %1397 = vmatprep.mubr.bf16.mxu1 %v321_v18 }
  0x92   : > { %459 = vmatmul.mubr.bf16.gmra.mrb[4].mxu0 %v320_v15 }
  0x93   : > { %468 = vmatprep.mubr.bf16.mxu0 %v1743_v0 }
  0x98   : > { %1398 = vmatmul.mubr.bf16.gmra.mrb[4].mxu1 %v322_v23 }
  0x99   : > { %1401 = vmatprep.mubr.bf16.mxu1 %v323_v24 }
  0x9a   : > { %469 = vmatmul.mubr.bf16.gmra.mrb[8].mxu0 %v321_v18 }
  0x9b   : > { %478 = vmatprep.mubr.bf16.mxu0 %v1743_v0 }
  0xa0   : > { %1402 = vmatmul.mubr.bf16.gmra.mrb[8].mxu1 %v324_v29 }
  0xa1   : > { %1405 = vmatprep.mubr.bf16.mxu1 %v325_v30 }
  0xa2   : > { %479 = vmatmul.mubr.bf16.gmra.mrb[12].mxu0 %v322_v23 }
  0xa3   : > { %488 = vmatprep.mubr.bf16.mxu0 %v1743_v0 }
  0xa8   : > { %1406 = vmatmul.mubr.bf16.gmra.mrb[12].mxu1 %v326_v33 }
  0xaa   : > { %489 = vmatmul.mubr.bf16.gmra.mrb[16].mxu0 %v323_v24 }
  0xab   : > { %498 = vmatprep.mubr.bf16.mxu0 %v1743_v0 }
  0xb2   : > { %499 = vmatmul.mubr.bf16.gmra.mrb[20].mxu0 %v324_v29 }
  0xb3   : > { %508 = vmatprep.mubr.bf16.mxu0 %v1743_v0 }
  0xba   : > { %509 = vmatmul.mubr.bf16.gmra.mrb[24].mxu0 %v325_v30 }
  0xbb   : > { %518 = vmatprep.mubr.bf16.mxu0 %v1743_v0 }
  0xc2   : > { %519 = vmatmul.mubr.bf16.gmra.mrb[28].mxu0 %v326_v33 }
 0x15d   : > { %v450_v40 = vpop.f32.mrb[0].mxu0 }
 0x15e   : > { %v452_v42 = vpop.f32.mrb[1].mxu0  ;;  %v451_v43 = vadd.f32 %v450_v40, %v1992_v39 }
 0x15f   : > { %v454_v0 = vpop.f32.mrb[2].mxu0  ;;  %v453_v46 = vadd.f32 %v452_v42, %v1994_v41 }
 0x160   : > { %v455_v44 = vadd.f32 %v454_v0, %v1992_v39  ;;  %v456_v45 = vpop.f32.mrb[3].mxu0 }
 0x161   : > { %v457_v47 = vadd.f32 %v456_v45, %v1994_v41 }
 0x162   : > { %v1223_v49 = vpack.c.bf16 %v455_v44, %v451_v43 }
 0x163   : > { %v1263_v50 = vpack.c.bf16 %v457_v47, %v453_v46  ;;  %v1395_v58 = vpop.f32.mrb[0].mxu1 }
 0x164   : > { %1224 = vst [vmem:[%s2004_s30] sm:$0xff] %v1223_v49   ;;  %v572_v61 = vadd.f32 %v1395_v58, %v2011_v52  ;;  %v563_v62 = vpop.f32.mrb[1].mxu1 }
 0x165   : > { %1264 = vst [vmem:[%s2008_s14] sm:$0xff] %v1263_v50   ;;  %v460_v51 = vpop.f32.mrb[4].mxu0  ;;  %v564_v1 = vadd.f32 %v563_v62, %v2011_v52  ;;  %v1396_v2 = vpop.f32.mrb[2].mxu1 }
 0x166   : > { %v462_v53 = vpop.f32.mrb[5].mxu0  ;;  %v461_v55 = vadd.f32 %v460_v51, %v1992_v39  ;;  %v575_v4 = vadd.f32 %v1396_v2, %v2011_v52  ;;  %v566_v5 = vpop.f32.mrb[3].mxu1 }
 0x167   : > { %v464_v54 = vpop.f32.mrb[6].mxu0  ;;  %v463_v59 = vadd.f32 %v462_v53, %v1994_v41  ;;  %v567_v6 = vadd.f32 %v566_v5, %v2011_v52 }
 0x168   : > { %v465_v56 = vadd.f32 %v464_v54, %v1992_v39  ;;  %v466_v57 = vpop.f32.mrb[7].mxu0  ;;  %v1308_v8 = vpack.c.bf16 %v575_v4, %v572_v61 }
 0x169   : > { %v467_v60 = vadd.f32 %v466_v57, %v1994_v41  ;;  %v1303_v10 = vpack.c.bf16 %v567_v6, %v564_v1 }
 0x16a   : > { %v1228_v63 = vpack.c.bf16 %v465_v56, %v461_v55  ;;  %1354 = vst [vmem:[%s2024_s27 + $0x8] sm:$0xff] %v1308_v8  }
 0x16b   : > { %v1268_v3 = vpack.c.bf16 %v467_v60, %v463_v59  ;;  %1304 = vst [vmem:[%s2024_s27] sm:$0xff] %v1303_v10   ;;  %v1399_v15 = vpop.f32.mrb[4].mxu1 }
 0x16c   : > { %1340 = vst [vmem:[%s2004_s30 + $0x8] sm:$0xff] %v1228_v63   ;;  %v588_v18 = vadd.f32 %v1399_v15, %v2011_v52  ;;  %v579_v19 = vpop.f32.mrb[5].mxu1 }
 0x16d   : > { %1347 = vst [vmem:[%s2008_s14 + $0x8] sm:$0xff] %v1268_v3   ;;  %v470_v7 = vpop.f32.mrb[8].mxu0  ;;  %v580_v21 = vadd.f32 %v579_v19, %v2011_v52  ;;  %v1400_v22 = vpop.f32.mrb[6].mxu1 }
 0x16e   : > { %v472_v9 = vpop.f32.mrb[9].mxu0  ;;  %v471_v12 = vadd.f32 %v470_v7, %v1992_v39  ;;  %v591_v24 = vadd.f32 %v1400_v22, %v2011_v52  ;;  %v582_v25 = vpop.f32.mrb[7].mxu1 }
 0x16f   : > { %v474_v11 = vpop.f32.mrb[10].mxu0  ;;  %v473_v16 = vadd.f32 %v472_v9, %v1994_v41  ;;  %v583_v26 = vadd.f32 %v582_v25, %v2011_v52 }
 0x170   : > { %v475_v13 = vadd.f32 %v474_v11, %v1992_v39  ;;  %v476_v14 = vpop.f32.mrb[11].mxu0  ;;  %v1318_v28 = vpack.c.bf16 %v591_v24, %v588_v18 }
 0x171   : > { %v477_v17 = vadd.f32 %v476_v14, %v1994_v41  ;;  %v1313_v30 = vpack.c.bf16 %v583_v26, %v580_v21 }
 0x172   : > { %v1233_v20 = vpack.c.bf16 %v475_v13, %v471_v12  ;;  %1356 = vst [vmem:[%s2024_s27 + $0x18] sm:$0xff] %v1318_v28  }
 0x173   : > { %v1273_v23 = vpack.c.bf16 %v477_v17, %v473_v16  ;;  %1355 = vst [vmem:[%s2024_s27 + $0x10] sm:$0xff] %v1313_v30   ;;  %v1403_v35 = vpop.f32.mrb[8].mxu1 }
 0x174   : > { %1341 = vst [vmem:[%s2004_s30 + $0x10] sm:$0xff] %v1233_v20   ;;  %v604_v38 = vadd.f32 %v1403_v35, %v2011_v52  ;;  %v595_v40 = vpop.f32.mrb[9].mxu1 }
 0x175   : > { %1348 = vst [vmem:[%s2008_s14 + $0x10] sm:$0xff] %v1273_v23   ;;  %v480_v27 = vpop.f32.mrb[12].mxu0  ;;  %v596_v0 = vadd.f32 %v595_v40, %v2011_v52  ;;  %v1404_v43 = vpop.f32.mrb[10].mxu1 }
 0x176   : > { %v482_v29 = vpop.f32.mrb[13].mxu0  ;;  %v481_v32 = vadd.f32 %v480_v27, %v1992_v39  ;;  %v607_v45 = vadd.f32 %v1404_v43, %v2011_v52  ;;  %v598_v46 = vpop.f32.mrb[11].mxu1 }
 0x177   : > { %v484_v31 = vpop.f32.mrb[14].mxu0  ;;  %v483_v36 = vadd.f32 %v482_v29, %v1994_v41  ;;  %v599_v47 = vadd.f32 %v598_v46, %v2011_v52 }
 0x178   : > { %v485_v33 = vadd.f32 %v484_v31, %v1992_v39  ;;  %v486_v34 = vpop.f32.mrb[15].mxu0  ;;  %v1328_v49 = vpack.c.bf16 %v607_v45, %v604_v38 }
 0x179   : > { %v487_v37 = vadd.f32 %v486_v34, %v1994_v41  ;;  %v1323_v51 = vpack.c.bf16 %v599_v47, %v596_v0 }
 0x17a   : > { %v1238_v42 = vpack.c.bf16 %v485_v33, %v481_v32  ;;  %1358 = vst [vmem:[%s2024_s27 + $0x28] sm:$0xff] %v1328_v49  }
 0x17b   : > { %v1278_v44 = vpack.c.bf16 %v487_v37, %v483_v36  ;;  %1357 = vst [vmem:[%s2024_s27 + $0x20] sm:$0xff] %v1323_v51   ;;  %v1407_v57 = vpop.f32.mrb[12].mxu1 }
 0x17c   : > { %1342 = vst [vmem:[%s2004_s30 + $0x18] sm:$0xff] %v1238_v42   ;;  %v620_v60 = vadd.f32 %v1407_v57, %v2011_v52  ;;  %v611_v61 = vpop.f32.mrb[13].mxu1 }
 0x17d   : > { %1349 = vst [vmem:[%s2008_s14 + $0x18] sm:$0xff] %v1278_v44   ;;  %v490_v48 = vpop.f32.mrb[16].mxu0  ;;  %v612_v63 = vadd.f32 %v611_v61, %v2011_v52  ;;  %v1408_v1 = vpop.f32.mrb[14].mxu1 }
 0x17e   : > { %v492_v50 = vpop.f32.mrb[17].mxu0  ;;  %v491_v54 = vadd.f32 %v490_v48, %v1992_v39  ;;  %v623_v3 = vadd.f32 %v1408_v1, %v2011_v52  ;;  %v614_v4 = vpop.f32.mrb[15].mxu1 }
 0x17f   : > { %v494_v53 = vpop.f32.mrb[18].mxu0  ;;  %v493_v58 = vadd.f32 %v492_v50, %v1994_v41  ;;  %v615_v5 = vadd.f32 %v614_v4, %v2011_v52 }
 0x180   : > { %v495_v55 = vadd.f32 %v494_v53, %v1992_v39  ;;  %v496_v56 = vpop.f32.mrb[19].mxu0  ;;  %v1338_v7 = vpack.c.bf16 %v623_v3, %v620_v60 }
 0x181   : > { %v497_v59 = vadd.f32 %v496_v56, %v1994_v41  ;;  %v1333_v9 = vpack.c.bf16 %v615_v5, %v612_v63 }
 0x182   : > { %v1243_v62 = vpack.c.bf16 %v495_v55, %v491_v54  ;;  %1360 = vst [vmem:[%s2024_s27 + $0x38] sm:$0xff] %v1338_v7  }
 0x183   : > { %v1283_v2 = vpack.c.bf16 %v497_v59, %v493_v58  ;;  %1359 = vst [vmem:[%s2024_s27 + $0x30] sm:$0xff] %v1333_v9   ;;  %s2256_s27 = sld [smem:[#allocation21_spill]] }
 0x184   : > { %1343 = vst [vmem:[%s2004_s30 + $0x20] sm:$0xff] %v1243_v62  }
 0x185   : > { %1350 = vst [vmem:[%s2008_s14 + $0x20] sm:$0xff] %v1283_v2   ;;  %v500_v6 = vpop.f32.mrb[20].mxu0 }
 0x186   : > { %v502_v8 = vpop.f32.mrb[21].mxu0  ;;  %v501_v11 = vadd.f32 %v500_v6, %v1992_v39 }
 0x187   : > { %v504_v10 = vpop.f32.mrb[22].mxu0  ;;  %v503_v14 = vadd.f32 %v502_v8, %v1994_v41 }
 0x188   : > { %v505_v12 = vadd.f32 %v504_v10, %v1992_v39  ;;  %v506_v13 = vpop.f32.mrb[23].mxu0 }
 0x189   : > { %v507_v52 = vadd.f32 %v506_v13, %v1994_v41  ;;  %s2106_s18 = scalar_lea.hbm %s2256_s27, %s1163_s6 }
 0x18a   : > { %v1248_v15 = vpack.c.bf16 %v505_v12, %v501_v11 }
 0x18b   : > { %v1288_v16 = vpack.c.bf16 %v507_v52, %v503_v14 }
 0x18c   : > { %1344 = vst [vmem:[%s2004_s30 + $0x28] sm:$0xff] %v1248_v15  }
 0x18d   : > { %1351 = vst [vmem:[%s2008_s14 + $0x28] sm:$0xff] %v1288_v16   ;;  %v510_v17 = vpop.f32.mrb[24].mxu0 }
 0x18e   : > { %v512_v18 = vpop.f32.mrb[25].mxu0  ;;  %v511_v20 = vadd.f32 %v510_v17, %v1992_v39 }
 0x18f   : > { %v514_v19 = vpop.f32.mrb[26].mxu0  ;;  %v513_v23 = vadd.f32 %v512_v18, %v1994_v41 }
 0x190   : > { %v515_v21 = vadd.f32 %v514_v19, %v1992_v39  ;;  %v516_v22 = vpop.f32.mrb[27].mxu0 }
 0x191   : > { %v517_v24 = vadd.f32 %v516_v22, %v1994_v41 }
 0x192   : > { %v1253_v25 = vpack.c.bf16 %v515_v21, %v511_v20 }
 0x193   : > { %v1293_v26 = vpack.c.bf16 %v517_v24, %v513_v23 }
 0x194   : > { %1345 = vst [vmem:[%s2004_s30 + $0x30] sm:$0xff] %v1253_v25  }
 0x195   : > { %1352 = vst [vmem:[%s2008_s14 + $0x30] sm:$0xff] %v1293_v26   ;;  %v520_v27 = vpop.f32.mrb[28].mxu0 }
 0x196   : > { %v522_v28 = vpop.f32.mrb[29].mxu0  ;;  %v521_v30 = vadd.f32 %v520_v27, %v1992_v39 }
 0x197   : > { %v524_v29 = vpop.f32.mrb[30].mxu0  ;;  %v523_v33 = vadd.f32 %v522_v28, %v1994_v41 }
 0x198   : > { %v525_v31 = vadd.f32 %v524_v29, %v1992_v39  ;;  %v526_v32 = vpop.f32.mrb[31].mxu0 }
 0x199   : > { %v527_v34 = vadd.f32 %v526_v32, %v1994_v41 }
 0x19a   : > { %v1258_v35 = vpack.c.bf16 %v525_v31, %v521_v30 }
 0x19b   : > { %v1298_v36 = vpack.c.bf16 %v527_v34, %v523_v33 }
 0x19c   : > { %1346 = vst [vmem:[%s2004_s30 + $0x38] sm:$0xff] %v1258_v35  }
 0x19d   : > { %1353 = vst [vmem:[%s2008_s14 + $0x38] sm:$0xff] %v1298_v36  }
 0x19e   : > { %1586 = shalt.err (!%p1583_p1)
}
 0x19f   : > { %s1587_s30 = scalar_lea.hbm %s2093_s13, 1024  ;;  %s1591_s12 = scalar_lea.hbm %s2223_s3, 4096 }
 0x1a0   : > { %p1588_p2 = scmp.ne.s32.totalorder %s2093_s13, %s1587_s30  ;;  %p1592_p9 = scmp.lt.u32.totalorder %s2093_s13, %s2223_s3 }
 0x1a1   : > { %p1593_p0 = scmp.lt.u32.totalorder %s1591_s12, %s1587_s30  ;;  %p1595_p8 = scmp.lt.u32.totalorder %s1587_s30, %s2093_s13 }
 0x1a2   : > { %p1589_p4 = pnand %p1588_p2, %p1882_p11 }
 0x1a3   : > { %p1594_p6 = por %p1593_p0, %p1592_p9 }
 0x1a4   : > { %p1590_p5 = pneg %p1589_p4 }
 0x1a5   : > { %p1596_p10 = por %p1595_p8, %p1594_p6 }
 0x1a7   : > { %p1597_p12 = pnand %p1596_p10, %p1590_p5 }
 0x1a9   : > { %1600 = shalt.err (!%p1597_p12)
}
 0x1aa   : > { %s1745_s17 = smov 64   ;;  %s1746_s9 = smov 4  }
 0x1ab   : > { %1415 = dma.vmem_to_hbm [thread:$0]  (%p1882_p11), %s2080_s15, 1024, %s2093_s13, %s867_s7, %s1745_s17, %s1745_s17, %s1746_s9  }
 0x1ac   : > { %s2138_s10 = scalar_lea.sflag [#allocation9], %s871_s22  ;;  %s1601_s23 = scalar_lea.vmem %s2082_s16, 1024 }
 0x1ad   : > { %p1602_p13 = scmp.ne.s32.totalorder %s2082_s16, %s1601_s23  ;;  %s1747_s30 = smov [#allocation8]  }
 0x1ae   : > { %s1605_s14 = sshll.u32 %s1747_s30, 4  ;;  %s1606_s14 = int_to_ptr.vmem [resolvable:$false] %s1605_s14 }
 0x1af   : > { %p1603_p3 = pnand %p1602_p13, %p1882_p11  ;;  %s1607_s6 = scalar_lea.vmem %s1606_s14, 2048 }
 0x1b0   : > { %p1608_p1 = scmp.lt.s32.totalorder %s2082_s16, %s1606_s14  ;;  %p1609_p2 = scmp.lt.s32.totalorder %s1607_s6, %s1601_s23 }
 0x1b1   : > { %p1604_p7 = pneg %p1603_p3 }
 0x1b2   : > { %p1610_p4 = por %p1609_p2, %p1608_p1 }
 0x1b4   : > { %p1611_p5 = pnand %p1610_p4, %p1604_p7 }
 0x1b6   : > { %1614 = shalt.err (!%p1611_p5)
}
 0x1b7   : > { %s1615_s26 = scalar_lea.hbm %s2098_s1, 1024  ;;  %s1619_s22 = scalar_lea.hbm %s2224_s4, 4096 }
 0x1b8   : > { %p1616_p9 = scmp.ne.s32.totalorder %s2098_s1, %s1615_s26  ;;  %p1620_p8 = scmp.lt.u32.totalorder %s2098_s1, %s2224_s4 }
 0x1b9   : > { %p1621_p10 = scmp.lt.u32.totalorder %s1619_s22, %s1615_s26  ;;  %p1623_p13 = scmp.lt.u32.totalorder %s1615_s26, %s2098_s1 }
 0x1ba   : > { %p1617_p0 = pnand %p1616_p9, %p1882_p11 }
 0x1bb   : > { %p1622_p12 = por %p1621_p10, %p1620_p8 }
 0x1bc   : > { %p1618_p6 = pneg %p1617_p0 }
 0x1bd   : > { %p1624_p3 = por %p1623_p13, %p1622_p12 }
 0x1bf   : > { %p1625_p7 = pnand %p1624_p3, %p1618_p6 }
 0x1c1   : > { %1628 = shalt.err (!%p1625_p7)
}
 0x1c2   : > { %1416 = dma.vmem_to_hbm [thread:$0]  (%p1882_p11), %s2082_s16, 1024, %s2098_s1, %s2138_s10, %s1745_s17, %s1745_s17, %s1746_s9  }
 0x1c3   : > { %s1629_s12 = scalar_lea.vmem %s2100_s21, 1024  ;;  %s1748_s5 = smov [#allocation10]  }
 0x1c4   : > { %p1630_p1 = scmp.ne.s32.totalorder %s2100_s21, %s1629_s12  ;;  %s1633_s28 = sshll.u32 %s1748_s5, 4  ;;  %s1634_s28 = int_to_ptr.vmem [resolvable:$false] %s1633_s28 }
 0x1c5   : > { %s1635_s23 = scalar_lea.vmem %s1634_s28, 2048  ;;  %p1636_p5 = scmp.lt.s32.totalorder %s2100_s21, %s1634_s28 }
 0x1c6   : > { %p1631_p2 = pnand %p1630_p1, %p1882_p11  ;;  %p1637_p9 = scmp.lt.s32.totalorder %s1635_s23, %s1629_s12 }
 0x1c8   : > { %p1632_p4 = pneg %p1631_p2  ;;  %p1638_p0 = por %p1637_p9, %p1636_p5 }
 0x1ca   : > { %p1639_p6 = pnand %p1638_p0, %p1632_p4 }
 0x1cc   : > { %1642 = shalt.err (!%p1639_p6)
}
 0x1cd   : > { %s1643_s16 = scalar_lea.hbm %s2106_s18, 1024  ;;  %s1647_s14 = scalar_lea.hbm %s2256_s27, 4096 }
 0x1ce   : > { %p1644_p8 = scmp.ne.s32.totalorder %s2106_s18, %s1643_s16  ;;  %p1648_p13 = scmp.lt.u32.totalorder %s2106_s18, %s2256_s27 }
 0x1cf   : > { %p1649_p3 = scmp.lt.u32.totalorder %s1647_s14, %s1643_s16  ;;  %p1651_p1 = scmp.lt.u32.totalorder %s1643_s16, %s2106_s18 }
 0x1d0   : > { %p1645_p10 = pnand %p1644_p8, %p1882_p11 }
 0x1d1   : > { %p1650_p7 = por %p1649_p3, %p1648_p13 }
 0x1d2   : > { %p1646_p12 = pneg %p1645_p10 }
 0x1d3   : > { %p1652_p2 = por %p1651_p1, %p1650_p7 }
 0x1d5   : > { %p1653_p4 = pnand %p1652_p2, %p1646_p12 }
 0x1d7   : > { %1656 = shalt.err (!%p1653_p4)
}
 0x1d8   : > { %1417 = dma.vmem_to_hbm [thread:$0]  (%p1882_p11), %s2100_s21, 1024, %s2106_s18, %s2138_s10, %s1745_s17, %s1745_s17, %s1746_s9  }
 0x1d9 PF: > { %s2257_s29 = sld [smem:[#allocation15_spill]]  ;;  %s2258_s15 = sld [smem:[#allocation17_spill]] }
 0x1da   : > { %p1442_p5 = scmp.ge.s32.totalorder %s1735_s25, 2 }
 0x1df   : > { %s943_s22 = sand.u32 1, %s2257_s29   ;;  %p2259_p9 = scmp.ne.s32.totalorder %s2258_s15, 0 }
 0x1e0   : > { %s944_s13 = scalar_lea.sflag [#allocation4], %s943_s22 }
 0x1e1   : > { %p1430_p0 = pnand %p1442_p5, %p2259_p9 }
 0x1e3   : > { %1698 = dma.done.wait (!%p1430_p0), %s944_s13, 1024  }
 0x1e4   : > { %1700 = vsyncadd (!%p1430_p0), %s944_s13, 4294966272  ;;  %s2260_s8 = sadd.s32 4294967294, %s1735_s25  }
 0x1e5   : > { %s952_s7 = sand.u32 1, %s2260_s8  }
 0x1e6   : > { %s953_s12 = scalar_lea.sflag [#allocation9], %s952_s7 }
 0x1e7   : > { %1702 = dma.done.wait (!%p1430_p0), %s953_s12, 2048  }
 0x1e8   : > { %1704 = vsyncadd (!%p1430_p0), %s953_s12, 4294965248  ;;  %s26_s25 = sadd.s32 1, %s1735_s25   ;;  %s2261_s21 = sld [smem:[#allocation16_spill]] }
 0x1e9   : > { %p23_p11 = scmp.ge.s32.totalorder %s26_s25, 6   ;;  %s2262_s23 = sld [smem:[#allocation18_spill]] }
 0x1ea   : > { %s2263_s17 = sld [smem:[#allocation19_spill]]  ;;  %s2264_s18 = smov %s1711_s19 }
 0x1eb   : > { %s2265_s19 = smov %s1715_s20  ;;  %s2266_s20 = smov %s1899_s11 }
 0x1ec   : > { %s2267_s22 = smov %s1731_s24  ;;  %25 = sbr.rel (!%p23_p11) target bundleno = 13 (0xd), region = 113 }
 0x1f0   : > { %s2268_s24 = smov %s2263_s17 }
 0x1f3   :  { %967 = vsyncpa [#allocation3], 1 }
 0x1f4   :  { %969 = vsyncpa [#allocation3 + $0x1], 1 }
 0x1f5   :  { %970 = vsyncpa [#allocation6], 1 }
 0x1f6   :  { %971 = vsyncpa [#allocation4], 1 }
 0x1f7   :  { %973 = vsyncpa [#allocation4 + $0x1], 1 }
 0x1f8   :  { %974 = vsyncpa [#allocation9], 1 }
 0x1f9   :  { %976 = vsyncpa [#allocation9 + $0x1], 1 }

</bundles_post_ra>
